<compile_context>
chip_gen: v7x
topology: tpu7x:2x2x1
jax: 0.10.0
libtpu: 0.0.40
codegen_flags: <defaults>
</compile_context>

<pallas_src>
import functools

import jax
import jax.numpy as jnp
from jax.experimental import pallas as pl
from jax.experimental.pallas import tpu as pltpu

_LANES = 128      # vreg lane width; lane-dense blocks use this as the last dim
_SUBLANES = 16    # multiple of both the f32 (8,128) and bf16 packed (16,128) tile rows


def _round_up(a: int, b: int) -> int:
    return ((a + b - 1) // b) * b


def _round_down(a: int, b: int) -> int:
    return (a // b) * b


def _default_block_bytes() -> int:
    """Per-block VMEM budget by TPU generation (in+out double buffering -> ~4x in flight).

    v5-class (16 MiB scoped-VMEM default): 2 MiB blocks -> ~8 MiB of buffers.
    v6e / v7x (32 MiB scoped default):     4 MiB blocks -> ~16 MiB of buffers.
    """
    try:
        kind = jax.devices()[0].device_kind.lower()
    except Exception:
        kind = ""
    if any(v in kind for v in ("v2", "v3", "v4", "v5")):
        return 2 << 20
    return 4 << 20


def _gaussian_body(x_ref, o_ref, *, mu: float, c: float):
    # Compute in f32 regardless of I/O dtype; cast back only at the store.
    x = x_ref[...].astype(jnp.float32)
    d = x - mu
    # exp((x - mu)^2 * c) with c = -1/(2 sigma^2): VALU sub + 2 muls, one EUP exp.
    o_ref[...] = jnp.exp((d * d) * c).astype(o_ref.dtype)


def gaussian_kernel(x: jax.Array, mu: float = 1.0, sigma: float = 1.0,
                    block_bytes: int | None = None) -> jax.Array:
    """exp(-(x - mu)^2 / (2 sigma^2)) elementwise via a single Pallas TPU kernel.

    Works for any shape / float dtype; output matches input shape and dtype.
    Exactly one HBM read and one HBM write of x (no pad/slice passes).
    """
    orig_shape, orig_dtype = x.shape, x.dtype
    n = x.size
    itemsize = jnp.dtype(orig_dtype).itemsize
    blk_bytes = int(block_bytes) if block_bytes is not None else _default_block_bytes()

    c = -1.0 / (2.0 * float(sigma) ** 2)   # fold the divide into one constant multiplier
    kernel = functools.partial(_gaussian_body, mu=float(mu), c=c)
    cost = pl.CostEstimate(flops=3 * n, transcendentals=n,
                           bytes_accessed=2 * n * itemsize)

    def call(x2d, tile, grid, index_map):
        return pl.pallas_call(
            kernel,
            out_shape=jax.ShapeDtypeStruct(x2d.shape, orig_dtype),
            grid_spec=pl.GridSpec(
                grid=grid,
                in_specs=[pl.BlockSpec(tile, index_map)],
                out_specs=pl.BlockSpec(tile, index_map),
            ),
            compiler_params=pltpu.CompilerParams(
                dimension_semantics=("parallel",),  # lets v7x split row tiles over 2 TCs
            ),
            cost_estimate=cost,
        )(x2d)

    if n % _LANES == 0:
        # Lane-dense fast path: free reshape to (rows, 128); unmasked 128-lane stores.
        rows = n // _LANES
        blk_rows = max(_SUBLANES, _round_down(blk_bytes // (_LANES * itemsize), _SUBLANES))
        tile_rows = rows if rows <= blk_rows else blk_rows  # full-dim escape for tiny inputs
        out = call(x.reshape(rows, _LANES), (tile_rows, _LANES),
                   (pl.cdiv(rows, tile_rows),), lambda i: (i, 0))
        return out.reshape(orig_shape)

    if x.ndim >= 2:
        # Ragged trailing dim (e.g. KNRM doc_len=200): keep it whole (full-dim escape),
        # block the collapsed leading dims; Pallas masks the final partial block.
        C = orig_shape[-1]
        R = n // C
        blk_rows = max(_SUBLANES, _round_down(blk_bytes // (C * itemsize), _SUBLANES))
        tile_rows = R if R <= blk_rows else blk_rows
        out = call(x.reshape(R, C), (tile_rows, C),
                   (pl.cdiv(R, tile_rows),), lambda i: (i, 0))
        return out.reshape(orig_shape)

    # 1-D input whose length is not a multiple of 128: block the lane axis in
    # 128-multiples and let Pallas mask the tail store.
    cols = n
    blk_cols = max(_LANES, _round_down(blk_bytes // itemsize, _LANES))
    tile_cols = cols if cols <= blk_cols else blk_cols
    out = call(x.reshape(1, cols), (1, tile_cols),
               (pl.cdiv(cols, tile_cols),), lambda i: (0, i))
    return out.reshape(orig_shape)


def gaussian_kernel_ref(x, mu: float = 1.0, sigma: float = 1.0):
    """Pure-JAX reference mirroring the PyTorch forward (f32 math)."""
    xf = x.astype(jnp.float32)
    numerator = -jnp.power(xf - mu, 2)
    denominator = 2.0 * sigma ** 2
    return jnp.exp(numerator / denominator)


if __name__ == "__main__":
    # GaussianKernel has no learned weights; mu/sigma are fixed scalars from __init__.
    mu, sigma = 1.0, 1.0
    k1, k2, k3, k4 = jax.random.split(jax.random.PRNGKey(0), 4)

    # 1) KNRM-style match matrix, lane-aligned (fast path).
    x1 = jax.random.uniform(k1, (2, 8, 128), jnp.float32, minval=-1.0, maxval=1.0)
    o1 = jax.block_until_ready(gaussian_kernel(x1, mu, sigma))
    r1 = gaussian_kernel_ref(x1, mu, sigma)
    assert o1.shape == x1.shape and o1.dtype == x1.dtype
    assert jnp.allclose(o1, r1, atol=1e-6, rtol=1e-6), "mismatch (aligned path)"

    # 2) Non-128-aligned doc length -> ragged path, no pad / no slice.
    x2 = jax.random.uniform(k2, (2, 7, 200), jnp.float32, minval=-1.0, maxval=1.0)
    o2 = jax.block_until_ready(gaussian_kernel(x2, mu=0.5, sigma=0.1))
    r2 = gaussian_kernel_ref(x2, mu=0.5, sigma=0.1)
    assert o2.shape == x2.shape and o2.dtype == x2.dtype
    assert jnp.allclose(o2, r2, atol=1e-6, rtol=1e-6), "mismatch (ragged path)"

    # 3) Multi-grid-step pipeline path (small input, artificially small blocks).
    x3 = jax.random.uniform(k3, (4, 64, 128), jnp.float32, minval=-1.0, maxval=1.0)
    o3 = jax.block_until_ready(gaussian_kernel(x3, mu, sigma, block_bytes=64 * 1024))
    r3 = gaussian_kernel_ref(x3, mu, sigma)
    assert jnp.allclose(o3, r3, atol=1e-6, rtol=1e-6), "mismatch (multi-tile path)"

    # 4) bf16 I/O (f32 internal math, cast on store) -- bf16 rounding tolerance.
    x4 = jax.random.uniform(k4, (2, 8, 128), jnp.bfloat16, minval=-1.0, maxval=1.0)
    o4 = jax.block_until_ready(gaussian_kernel(x4, mu, sigma))
    r4 = gaussian_kernel_ref(x4, mu, sigma).astype(jnp.bfloat16)
    assert o4.dtype == jnp.bfloat16
    assert jnp.allclose(o4.astype(jnp.float32), r4.astype(jnp.float32),
                        atol=1e-2, rtol=1e-2), "mismatch (bf16 path)"

    print("KERNEL_OK")
</pallas_src>

<mosaic_0001>
module attributes {stable_mosaic.version = 11 : i64} {
  func.func @_gaussian_body(%arg0: i32, %arg1: memref<16x128xf32, #tpu.memory_space<vmem>>, %arg2: memref<16x128xf32, #tpu.memory_space<vmem>>) attributes {dimension_semantics = [#tpu.dimension_semantics<parallel>], iteration_bounds = array<i64: 1>, scalar_prefetch = 0 : i64, scratch_operands = 0 : i64, tpu.core_type = #tpu.core_type<tc>, window_params = [{transform_indices = @transform_0, window_bounds = array<i64: 16, 128>}, {transform_indices = @transform_1, window_bounds = array<i64: 16, 128>}]} {
    %c0 = arith.constant 0 : index
    %c0_0 = arith.constant 0 : index
    %0 = vector.load %arg1[%c0, %c0_0] : memref<16x128xf32, #tpu.memory_space<vmem>>, vector<16x128xf32>
    %cst = arith.constant 1.000000e+00 : f32
    %1 = vector.broadcast %cst : f32 to vector<16x128xf32>
    %2 = arith.subf %0, %1 : vector<16x128xf32>
    %3 = arith.mulf %2, %2 : vector<16x128xf32>
    %cst_1 = arith.constant -5.000000e-01 : f32
    %4 = vector.broadcast %cst_1 : f32 to vector<16x128xf32>
    %5 = arith.mulf %3, %4 : vector<16x128xf32>
    %6 = math.exp %5 : vector<16x128xf32>
    %c0_2 = arith.constant 0 : index
    %c0_3 = arith.constant 0 : index
    %7 = vector.load %arg2[%c0_2, %c0_3] : memref<16x128xf32, #tpu.memory_space<vmem>>, vector<16x128xf32>
    tpu.vector_store %arg2[%c0_2, %c0_3], %6 {strides = array<i32>} : memref<16x128xf32, #tpu.memory_space<vmem>>, vector<16x128xf32>,
    return
  }
  func.func @transform_0(%arg0: i32) -> (i32, i32) {
    %c0_i32 = arith.constant 0 : i32
    %c0_i32_0 = arith.constant 0 : i32
    return %arg0, %c0_i32 : i32, i32
  }
  func.func @transform_1(%arg0: i32) -> (i32, i32) {
    %c0_i32 = arith.constant 0 : i32
    %c0_i32_0 = arith.constant 0 : i32
    return %arg0, %c0_i32 : i32, i32
  }
}

</mosaic_0001>

<bundles_post_ra>
// kernel: tpu_custom_call.1
= control target key start
LH: loop header
LB: loop body
LE: loop exit
PB: predicated region body
PF: predicated region fallthrough
CT: control target
= control target key end

     0   :  { %6 = vsyncpa [#allocation3], 0  ;;  %s156_s0 = inlined_call_operand.hbm [shape: f32[16,128], index: 0, kind: input, shape index: {}]   ;;  %s157_s1 = inlined_call_operand.hbm [shape: f32[16,128], index: 1, kind: output, shape index: {}]  }
   0x1   :  { %7 = vsyncpa [#allocation4], 0  ;;  %s112_s6 = smov [#allocation2]   ;;  %s64_s10 = scalar_lea.hbm %s156_s0, 256 }
   0x2   :  { %s13_s7 = sshll.u32 %s112_s6, 4  ;;  %p65_p0 = scmp.ne.s32.totalorder %s156_s0, %s64_s10  ;;  %s14_s7 = int_to_ptr.vmem [resolvable:$true] %s13_s7 }
   0x3   :  { %p68_p1 = scmp.lt.u32.totalorder %s64_s10, %s156_s0 }
   0x5   :  { %p70_p2 = pnand %p68_p1, %p65_p0 }
   0x7   :  { %73 = shalt.err (!%p70_p2)
}
   0x8   :  { %s74_s15 = scalar_lea.vmem %s14_s7, 256  ;;  %p79_p4 = scmp.lt.s32.totalorder %s14_s7, %s14_s7 }
   0x9   :  { %p75_p3 = scmp.ne.s32.totalorder %s14_s7, %s74_s15  ;;  %p80_p5 = scmp.lt.s32.totalorder %s74_s15, %s74_s15 }
   0xb   :  { %p81_p6 = por %p80_p5, %p79_p4 }
   0xd   :  { %p82_p7 = pnand %p81_p6, %p75_p3 }
   0xf   :  { %85 = shalt.err (!%p82_p7)
}
  0x10   :  { %s113_s16 = smov 128   ;;  %s114_s17 = smov 8  }
  0x11   :  { %19 = dma.hbm_to_vmem [thread:$0]  %s156_s0, 256, %s14_s7, [#allocation3], %s113_s16, %s113_s16, %s114_s17  }
  0x12   :  { %108 = dma.done.wait [#allocation3], 256  }
  0x13   :  { %109 = vsyncadd [#allocation3], 4294967040  ;;  %v23_v0 = vld [vmem:[#allocation2] sm:$0xff]  ;;  %v24_v1 = vld [vmem:[#allocation2 + $0x8] sm:$0xff]  ;;  %s115_s20 = smov [#allocation5]  }
  0x14   :  { %v54_v2 = vadd.f32 -1.0, %v23_v0  ;;  %v55_v3 = vadd.f32 -1.0, %v24_v1  ;;  %s42_s21 = sshll.u32 %s115_s20, 4  ;;  %s43_s21 = int_to_ptr.vmem [resolvable:$true] %s42_s21 }
  0x15   :  { %s86_s0 = scalar_lea.vmem %s43_s21, 256  ;;  %p91_p9 = scmp.lt.s32.totalorder %s43_s21, %s43_s21 }
  0x16   :  { %v27_v4 = vmul.f32 %v54_v2, %v54_v2  ;;  %v28_v5 = vmul.f32 %v55_v3, %v55_v3  ;;  %p87_p8 = scmp.ne.s32.totalorder %s43_s21, %s86_s0  ;;  %p92_p10 = scmp.lt.s32.totalorder %s86_s0, %s86_s0 }
  0x18   :  { %v29_v6 = vmul.f32 -0.5, %v27_v4  ;;  %v30_v7 = vmul.f32 -0.5, %v28_v5  ;;  %p93_p11 = por %p92_p10, %p91_p9 }
  0x1a   :  { %v31_v8 = vmul.f32 1.442695, %v29_v6  ;;  %v33_v9 = vmul.f32 1.442695, %v30_v7  ;;  %p94_p12 = pnand %p93_p11, %p87_p8 }
  0x1c   :  { %60 = vpow2.f32 %v31_v8 }
  0x1d   :  { %62 = vpow2.f32 %v33_v9 }
  0x26   :  { %v61_v10 = vpop.eup %60 }
  0x27   :  { %v63_v11 = vpop.eup %62  ;;  %35 = vst [vmem:[#allocation5] sm:$0xff] %v61_v10 }
  0x28   :  { %36 = vst [vmem:[#allocation5 + $0x8] sm:$0xff] %v63_v11 }
  0x29   :  { %97 = shalt.err (!%p94_p12)
}
  0x2a   :  { %s98_s24 = scalar_lea.hbm %s157_s1, 256 }
  0x2b   :  { %p99_p13 = scmp.ne.s32.totalorder %s157_s1, %s98_s24  ;;  %p102_p0 = scmp.lt.u32.totalorder %s98_s24, %s157_s1 }
  0x2d   :  { %p104_p1 = pnand %p102_p0, %p99_p13 }
  0x2f   :  { %107 = shalt.err (!%p104_p1)
}
  0x30   :  { %48 = dma.vmem_to_hbm [thread:$0]  %s43_s21, 256, %s157_s1, [#allocation4], %s113_s16, %s113_s16, %s114_s17  }
  0x31   :  { %110 = dma.done.wait [#allocation4], 256  }
  0x32   :  { %111 = vsyncadd [#allocation4], 4294967040 }
  0x33   :  { %52 = vsyncpa [#allocation3], 1 }
  0x34   :  { %53 = vsyncpa [#allocation4], 1 }

</bundles_post_ra>
